<compile_context>
chip_gen: v6e
topology: v6e:2x2x1
jax: 0.10.0
libtpu: 0.0.40
codegen_flags: <defaults>
</compile_context>

<pallas_src>
import jax
import jax.numpy as jnp
from jax.experimental import pallas as pl
from jax.experimental.pallas import tpu as pltpu


def action_value_kernel(
    obs_ref,    # (T, Bb, D)  f32   time-major obs block
    act_ref,    # (Bb, A)     f32
    wih_ref,    # (D, H)      f32   = W_ih.T
    whh_ref,    # (H, H)      f32   = W_hh.T
    brnn_ref,   # (1, H)      f32   = b_ih + b_hh
    w1h_ref,    # (H, H1)     f32   = W1[:, :H].T  (hidden part of the concat)
    w1a_ref,    # (A, H1)     f32   = W1[:, H:].T  (action part of the concat)
    b1_ref,     # (1, H1)     f32
    w2_ref,     # (1, H1)     f32   = W2 row (used as a VPU reduce, not a matmul)
    b2_ref,     # (1, 1)      f32
    out_ref,    # (Bb, 1)     f32
):
    T, Bb, D = obs_ref.shape
    H = whh_ref.shape[0]

    # --- Hoisted input projection: one batched matmul, bias folded in.
    #     pre[t, b] = x_{b,t} @ W_ih^T + (b_ih + b_hh)
    pre = (
        jnp.dot(
            obs_ref[...].reshape(T * Bb, D),
            wih_ref[...],
            preferred_element_type=jnp.float32,
        )
        + brnn_ref[...]
    ).reshape(T, Bb, H)

    whh = whh_ref[...]

    # --- Elman recurrence, fully unrolled (T static). h0 = 0 => step 0 is just tanh(pre[0]).
    h = jnp.tanh(pre[0])
    for t in range(1, T):
        h = jnp.tanh(pre[t] + jnp.dot(h, whh, preferred_element_type=jnp.float32))

    # --- MLP on cat([h, act], -1); concat folded into two matmuls:
    #     cat([h, act]) @ W1^T == h @ W1[:, :H].T + act @ W1[:, H:].T
    z1 = (
        jnp.dot(h, w1h_ref[...], preferred_element_type=jnp.float32)
        + jnp.dot(act_ref[...], w1a_ref[...], preferred_element_type=jnp.float32)
        + b1_ref[...]
    )
    z1 = jnp.maximum(z1, 0.0)  # hidden activation (ReLU)

    # --- Final Linear(H1 -> 1): VPU multiply + lane reduction (keeps the MXU free).
    q = jnp.sum(z1 * w2_ref[...], axis=-1, keepdims=True) + b2_ref[...]
    out_ref[...] = q  # (Bb, 1)


def action_value_forward(obs, act, params, *, block_b=None):
    """obs: (B, T, D_obs) float32 (PyTorch batch_first layout), act: (B, A). Returns (B,)."""
    B, T, D = obs.shape
    A = act.shape[1]
    H = params["w_hh"].shape[0]
    H1 = params["w1"].shape[0]

    # Batch tiling: default = whole batch in one block. For large B pass a block_b that
    # divides B and is a multiple of 8 to stream obs and shard across TensorCores.
    bb = B if block_b is None else block_b
    assert B % bb == 0, "block_b must divide B"
    nb = B // bb

    # Time-major layout so the unrolled recurrence slices the leading (untiled) axis.
    obs_tbd = jnp.transpose(obs, (1, 0, 2)).astype(jnp.float32)          # (T, B, D)
    b_rnn = (params["b_ih"] + params["b_hh"]).reshape(1, H).astype(jnp.float32)

    args = (
        obs_tbd,                                       # (T, B, D)
        act.astype(jnp.float32),                       # (B, A)
        params["w_ih"].T.astype(jnp.float32),          # (D, H)
        params["w_hh"].T.astype(jnp.float32),          # (H, H)
        b_rnn,                                         # (1, H)
        params["w1"][:, :H].T.astype(jnp.float32),     # (H, H1)
        params["w1"][:, H:].T.astype(jnp.float32),     # (A, H1)
        params["b1"].reshape(1, H1).astype(jnp.float32),
        params["w2"].reshape(1, H1).astype(jnp.float32),
        params["b2"].reshape(1, 1).astype(jnp.float32),
    )

    in_specs = [
        pl.BlockSpec((T, bb, D), lambda i: (0, i, 0)),   # obs: tiled over batch
        pl.BlockSpec((bb, A), lambda i: (i, 0)),         # act: tiled over batch
        pl.BlockSpec((D, H), lambda i: (0, 0)),          # weights: full blocks
        pl.BlockSpec((H, H), lambda i: (0, 0)),
        pl.BlockSpec((1, H), lambda i: (0, 0)),
        pl.BlockSpec((H, H1), lambda i: (0, 0)),
        pl.BlockSpec((A, H1), lambda i: (0, 0)),
        pl.BlockSpec((1, H1), lambda i: (0, 0)),
        pl.BlockSpec((1, H1), lambda i: (0, 0)),
        pl.BlockSpec((1, 1), lambda i: (0, 0)),
    ]
    out_specs = pl.BlockSpec((bb, 1), lambda i: (i, 0))

    q = pl.pallas_call(
        action_value_kernel,
        out_shape=jax.ShapeDtypeStruct((B, 1), jnp.float32),
        grid=(nb,),
        in_specs=in_specs,
        out_specs=out_specs,
        compiler_params=pltpu.CompilerParams(
            dimension_semantics=("parallel",),
        ),
    )(*args)

    return jnp.squeeze(q, axis=-1)  # (B,)  == torch.squeeze(q, -1)


def action_value_reference(obs, act, params):
    """Pure-JAX reference matching the PyTorch module (for correctness check)."""
    B, T, D = obs.shape
    H = params["w_hh"].shape[0]
    h = jnp.zeros((B, H), dtype=jnp.float32)
    for t in range(T):
        h = jnp.tanh(
            obs[:, t, :] @ params["w_ih"].T + params["b_ih"]
            + h @ params["w_hh"].T + params["b_hh"]
        )
    x = jnp.concatenate([h, act], axis=-1)
    z1 = jnp.maximum(x @ params["w1"].T + params["b1"], 0.0)
    q = z1 @ params["w2"].T + params["b2"]
    return jnp.squeeze(q, axis=-1)


def make_params(key, obs_dim, act_dim, hidden_sizes):
    """Deterministic synthetic parameters (PyTorch-style shapes)."""
    H = hidden_sizes[0]
    H1 = hidden_sizes[1]
    ks = jax.random.split(key, 8)
    init = lambda k, shape, scale: (scale * jax.random.normal(k, shape)).astype(jnp.float32)
    return {
        # nn.RNN(obs_dim, H, 1) parameters
        "w_ih": init(ks[0], (H, obs_dim), 0.3),
        "w_hh": init(ks[1], (H, H), 0.3),
        "b_ih": init(ks[2], (H,), 0.1),
        "b_hh": init(ks[3], (H,), 0.1),
        # mlp([H + act_dim, H1, 1]): Linear(H+A -> H1) + ReLU, Linear(H1 -> 1)
        "w1": init(ks[4], (H1, H + act_dim), 0.3),
        "b1": init(ks[5], (H1,), 0.1),
        "w2": init(ks[6], (1, H1), 0.3),
        "b2": init(ks[7], (1,), 0.1),
    }


if __name__ == "__main__":
    # Small shapes consistent with the module:
    # obs: (batch=2, seq=8, obs_feat=4); act: (batch=2, act_dim=2)
    # kwargs: obs_dim=(8, 4), act_dim=2, hidden_sizes=[32, 32], hidden_activation='relu'
    B, T, D_OBS, A = 2, 8, 4, 2
    HIDDEN_SIZES = [32, 32]

    key = jax.random.PRNGKey(0)
    k_obs, k_act, k_par = jax.random.split(key, 3)

    obs = jax.random.normal(k_obs, (B, T, D_OBS), dtype=jnp.float32)
    act = jax.random.normal(k_act, (B, A), dtype=jnp.float32)
    params = make_params(k_par, D_OBS, A, HIDDEN_SIZES)

    q = action_value_forward(obs, act, params)
    q = jax.block_until_ready(q)
    assert q.shape == (B,), q.shape

    q_ref = jax.block_until_ready(action_value_reference(obs, act, params))
    assert jnp.allclose(q, q_ref, atol=1e-5, rtol=1e-5), (q, q_ref)

    print("KERNEL_OK")
</pallas_src>

<mosaic_0001>
module attributes {stable_mosaic.version = 11 : i64} {
  func.func @action_value_kernel(%arg0: i32, %arg1: memref<8x2x4xf32, #tpu.memory_space<vmem>>, %arg2: memref<2x2xf32, #tpu.memory_space<vmem>>, %arg3: memref<4x32xf32, #tpu.memory_space<vmem>>, %arg4: memref<32x32xf32, #tpu.memory_space<vmem>>, %arg5: memref<1x32xf32, #tpu.memory_space<vmem>>, %arg6: memref<32x32xf32, #tpu.memory_space<vmem>>, %arg7: memref<2x32xf32, #tpu.memory_space<vmem>>, %arg8: memref<1x32xf32, #tpu.memory_space<vmem>>, %arg9: memref<1x32xf32, #tpu.memory_space<vmem>>, %arg10: memref<1x1xf32, #tpu.memory_space<vmem>>, %arg11: memref<2x1xf32, #tpu.memory_space<vmem>>) attributes {dimension_semantics = [#tpu.dimension_semantics<parallel>], iteration_bounds = array<i64: 1>, scalar_prefetch = 0 : i64, scratch_operands = 0 : i64, tpu.core_type = #tpu.core_type<tc>, window_params = [{transform_indices = @transform_0, window_bounds = array<i64: 8, 2, 4>}, {transform_indices = @transform_1, window_bounds = array<i64: 2, 2>}, {pipeline_mode = #tpu.pipeline_mode<synchronous>, transform_indices = @transform_2, window_bounds = array<i64: 4, 32>}, {pipeline_mode = #tpu.pipeline_mode<synchronous>, transform_indices = @transform_3, window_bounds = array<i64: 32, 32>}, {pipeline_mode = #tpu.pipeline_mode<synchronous>, transform_indices = @transform_4, window_bounds = array<i64: 1, 32>}, {pipeline_mode = #tpu.pipeline_mode<synchronous>, transform_indices = @transform_5, window_bounds = array<i64: 32, 32>}, {pipeline_mode = #tpu.pipeline_mode<synchronous>, transform_indices = @transform_6, window_bounds = array<i64: 2, 32>}, {pipeline_mode = #tpu.pipeline_mode<synchronous>, transform_indices = @transform_7, window_bounds = array<i64: 1, 32>}, {pipeline_mode = #tpu.pipeline_mode<synchronous>, transform_indices = @transform_8, window_bounds = array<i64: 1, 32>}, {pipeline_mode = #tpu.pipeline_mode<synchronous>, transform_indices = @transform_9, window_bounds = array<i64: 1, 1>}, {transform_indices = @transform_10, window_bounds = array<i64: 2, 1>}]} {
    %c0 = arith.constant 0 : index
    %c0_0 = arith.constant 0 : index
    %c0_1 = arith.constant 0 : index
    %0 = vector.load %arg1[%c0, %c0_0, %c0_1] : memref<8x2x4xf32, #tpu.memory_space<vmem>>, vector<8x2x4xf32>
    %1 = vector.shape_cast %0 : vector<8x2x4xf32> to vector<16x4xf32>
    %c0_2 = arith.constant 0 : index
    %c0_3 = arith.constant 0 : index
    %2 = vector.load %arg3[%c0_2, %c0_3] : memref<4x32xf32, #tpu.memory_space<vmem>>, vector<4x32xf32>
    %cst = arith.constant dense<0.000000e+00> : vector<16x32xf32>
    %3 = tpu.matmul %1, %2, %cst {dimension_numbers = #tpu.dot_dimension_numbers<[1], [0], [0], [1], [0, 0, 1, 1], [], []>} : vector<16x4xf32>, vector<4x32xf32>, vector<16x32xf32> -> vector<16x32xf32>
    %c0_4 = arith.constant 0 : index
    %c0_5 = arith.constant 0 : index
    %4 = vector.load %arg5[%c0_4, %c0_5] : memref<1x32xf32, #tpu.memory_space<vmem>>, vector<1x32xf32>
    %5 = vector.broadcast %4 : vector<1x32xf32> to vector<16x32xf32>
    %6 = arith.addf %3, %5 : vector<16x32xf32>
    %7 = vector.shape_cast %6 : vector<16x32xf32> to vector<8x2x32xf32>
    %c0_6 = arith.constant 0 : index
    %c0_7 = arith.constant 0 : index
    %8 = vector.load %arg4[%c0_6, %c0_7] : memref<32x32xf32, #tpu.memory_space<vmem>>, vector<32x32xf32>
    %9 = vector.extract_strided_slice %7 {offsets = [0, 0, 0], sizes = [1, 2, 32], strides = [1, 1, 1]} : vector<8x2x32xf32> to vector<1x2x32xf32>
    %10 = vector.shape_cast %9 : vector<1x2x32xf32> to vector<2x32xf32>
    %11 = math.tanh %10 : vector<2x32xf32>
    %12 = vector.extract_strided_slice %7 {offsets = [1, 0, 0], sizes = [1, 2, 32], strides = [1, 1, 1]} : vector<8x2x32xf32> to vector<1x2x32xf32>
    %13 = vector.shape_cast %12 : vector<1x2x32xf32> to vector<2x32xf32>
    %cst_8 = arith.constant dense<0.000000e+00> : vector<2x32xf32>
    %14 = tpu.matmul %11, %8, %cst_8 {dimension_numbers = #tpu.dot_dimension_numbers<[1], [0], [0], [1], [0, 0, 1, 1], [], []>} : vector<2x32xf32>, vector<32x32xf32>, vector<2x32xf32> -> vector<2x32xf32>
    %15 = arith.addf %13, %14 : vector<2x32xf32>
    %16 = math.tanh %15 : vector<2x32xf32>
    %17 = vector.extract_strided_slice %7 {offsets = [2, 0, 0], sizes = [1, 2, 32], strides = [1, 1, 1]} : vector<8x2x32xf32> to vector<1x2x32xf32>
    %18 = vector.shape_cast %17 : vector<1x2x32xf32> to vector<2x32xf32>
    %cst_9 = arith.constant dense<0.000000e+00> : vector<2x32xf32>
    %19 = tpu.matmul %16, %8, %cst_9 {dimension_numbers = #tpu.dot_dimension_numbers<[1], [0], [0], [1], [0, 0, 1, 1], [], []>} : vector<2x32xf32>, vector<32x32xf32>, vector<2x32xf32> -> vector<2x32xf32>
    %20 = arith.addf %18, %19 : vector<2x32xf32>
    %21 = math.tanh %20 : vector<2x32xf32>
    %22 = vector.extract_strided_slice %7 {offsets = [3, 0, 0], sizes = [1, 2, 32], strides = [1, 1, 1]} : vector<8x2x32xf32> to vector<1x2x32xf32>
    %23 = vector.shape_cast %22 : vector<1x2x32xf32> to vector<2x32xf32>
    %cst_10 = arith.constant dense<0.000000e+00> : vector<2x32xf32>
    %24 = tpu.matmul %21, %8, %cst_10 {dimension_numbers = #tpu.dot_dimension_numbers<[1], [0], [0], [1], [0, 0, 1, 1], [], []>} : vector<2x32xf32>, vector<32x32xf32>, vector<2x32xf32> -> vector<2x32xf32>
    %25 = arith.addf %23, %24 : vector<2x32xf32>
    %26 = math.tanh %25 : vector<2x32xf32>
    %27 = vector.extract_strided_slice %7 {offsets = [4, 0, 0], sizes = [1, 2, 32], strides = [1, 1, 1]} : vector<8x2x32xf32> to vector<1x2x32xf32>
    %28 = vector.shape_cast %27 : vector<1x2x32xf32> to vector<2x32xf32>
    %cst_11 = arith.constant dense<0.000000e+00> : vector<2x32xf32>
    %29 = tpu.matmul %26, %8, %cst_11 {dimension_numbers = #tpu.dot_dimension_numbers<[1], [0], [0], [1], [0, 0, 1, 1], [], []>} : vector<2x32xf32>, vector<32x32xf32>, vector<2x32xf32> -> vector<2x32xf32>
    %30 = arith.addf %28, %29 : vector<2x32xf32>
    %31 = math.tanh %30 : vector<2x32xf32>
    %32 = vector.extract_strided_slice %7 {offsets = [5, 0, 0], sizes = [1, 2, 32], strides = [1, 1, 1]} : vector<8x2x32xf32> to vector<1x2x32xf32>
    %33 = vector.shape_cast %32 : vector<1x2x32xf32> to vector<2x32xf32>
    %cst_12 = arith.constant dense<0.000000e+00> : vector<2x32xf32>
    %34 = tpu.matmul %31, %8, %cst_12 {dimension_numbers = #tpu.dot_dimension_numbers<[1], [0], [0], [1], [0, 0, 1, 1], [], []>} : vector<2x32xf32>, vector<32x32xf32>, vector<2x32xf32> -> vector<2x32xf32>
    %35 = arith.addf %33, %34 : vector<2x32xf32>
    %36 = math.tanh %35 : vector<2x32xf32>
    %37 = vector.extract_strided_slice %7 {offsets = [6, 0, 0], sizes = [1, 2, 32], strides = [1, 1, 1]} : vector<8x2x32xf32> to vector<1x2x32xf32>
    %38 = vector.shape_cast %37 : vector<1x2x32xf32> to vector<2x32xf32>
    %cst_13 = arith.constant dense<0.000000e+00> : vector<2x32xf32>
    %39 = tpu.matmul %36, %8, %cst_13 {dimension_numbers = #tpu.dot_dimension_numbers<[1], [0], [0], [1], [0, 0, 1, 1], [], []>} : vector<2x32xf32>, vector<32x32xf32>, vector<2x32xf32> -> vector<2x32xf32>
    %40 = arith.addf %38, %39 : vector<2x32xf32>
    %41 = math.tanh %40 : vector<2x32xf32>
    %42 = vector.extract_strided_slice %7 {offsets = [7, 0, 0], sizes = [1, 2, 32], strides = [1, 1, 1]} : vector<8x2x32xf32> to vector<1x2x32xf32>
    %43 = vector.shape_cast %42 : vector<1x2x32xf32> to vector<2x32xf32>
    %cst_14 = arith.constant dense<0.000000e+00> : vector<2x32xf32>
    %44 = tpu.matmul %41, %8, %cst_14 {dimension_numbers = #tpu.dot_dimension_numbers<[1], [0], [0], [1], [0, 0, 1, 1], [], []>} : vector<2x32xf32>, vector<32x32xf32>, vector<2x32xf32> -> vector<2x32xf32>
    %45 = arith.addf %43, %44 : vector<2x32xf32>
    %46 = math.tanh %45 : vector<2x32xf32>
    %c0_15 = arith.constant 0 : index
    %c0_16 = arith.constant 0 : index
    %47 = vector.load %arg6[%c0_15, %c0_16] : memref<32x32xf32, #tpu.memory_space<vmem>>, vector<32x32xf32>
    %cst_17 = arith.constant dense<0.000000e+00> : vector<2x32xf32>
    %48 = tpu.matmul %46, %47, %cst_17 {dimension_numbers = #tpu.dot_dimension_numbers<[1], [0], [0], [1], [0, 0, 1, 1], [], []>} : vector<2x32xf32>, vector<32x32xf32>, vector<2x32xf32> -> vector<2x32xf32>
    %c0_18 = arith.constant 0 : index
    %c0_19 = arith.constant 0 : index
    %49 = vector.load %arg2[%c0_18, %c0_19] : memref<2x2xf32, #tpu.memory_space<vmem>>, vector<2x2xf32>
    %c0_20 = arith.constant 0 : index
    %c0_21 = arith.constant 0 : index
    %50 = vector.load %arg7[%c0_20, %c0_21] : memref<2x32xf32, #tpu.memory_space<vmem>>, vector<2x32xf32>
    %cst_22 = arith.constant dense<0.000000e+00> : vector<2x32xf32>
    %51 = tpu.matmul %49, %50, %cst_22 {dimension_numbers = #tpu.dot_dimension_numbers<[1], [0], [0], [1], [0, 0, 1, 1], [], []>} : vector<2x2xf32>, vector<2x32xf32>, vector<2x32xf32> -> vector<2x32xf32>
    %52 = arith.addf %48, %51 : vector<2x32xf32>
    %c0_23 = arith.constant 0 : index
    %c0_24 = arith.constant 0 : index
    %53 = vector.load %arg8[%c0_23, %c0_24] : memref<1x32xf32, #tpu.memory_space<vmem>>, vector<1x32xf32>
    %54 = vector.broadcast %53 : vector<1x32xf32> to vector<2x32xf32>
    %55 = arith.addf %52, %54 : vector<2x32xf32>
    %cst_25 = arith.constant 0.000000e+00 : f32
    %56 = vector.broadcast %cst_25 : f32 to vector<2x32xf32>
    %57 = arith.maximumf %55, %56 : vector<2x32xf32>
    %c0_26 = arith.constant 0 : index
    %c0_27 = arith.constant 0 : index
    %58 = vector.load %arg9[%c0_26, %c0_27] : memref<1x32xf32, #tpu.memory_space<vmem>>, vector<1x32xf32>
    %59 = vector.broadcast %58 : vector<1x32xf32> to vector<2x32xf32>
    %60 = arith.mulf %57, %59 : vector<2x32xf32>
    %cst_28 = arith.constant dense<0.000000e+00> : vector<2xf32>
    %61 = vector.multi_reduction <add>, %60, %cst_28 [1] : vector<2x32xf32> to vector<2xf32>
    %62 = vector.shape_cast %61 : vector<2xf32> to vector<2x1xf32>
    %c0_29 = arith.constant 0 : index
    %c0_30 = arith.constant 0 : index
    %63 = vector.load %arg10[%c0_29, %c0_30] : memref<1x1xf32, #tpu.memory_space<vmem>>, vector<1x1xf32>
    %64 = vector.broadcast %63 : vector<1x1xf32> to vector<2x1xf32>
    %65 = arith.addf %62, %64 : vector<2x1xf32>
    %c0_31 = arith.constant 0 : index
    %c0_32 = arith.constant 0 : index
    %66 = vector.load %arg11[%c0_31, %c0_32] : memref<2x1xf32, #tpu.memory_space<vmem>>, vector<2x1xf32>
    tpu.vector_store %arg11[%c0_31, %c0_32], %65 {strides = array<i32>} : memref<2x1xf32, #tpu.memory_space<vmem>>, vector<2x1xf32>,
    return
  }
  func.func @transform_0(%arg0: i32) -> (i32, i32, i32) {
    %c0_i32 = arith.constant 0 : i32
    %c0_i32_0 = arith.constant 0 : i32
    %c0_i32_1 = arith.constant 0 : i32
    return %c0_i32, %arg0, %c0_i32_0 : i32, i32, i32
  }
  func.func @transform_1(%arg0: i32) -> (i32, i32) {
    %c0_i32 = arith.constant 0 : i32
    %c0_i32_0 = arith.constant 0 : i32
    return %arg0, %c0_i32 : i32, i32
  }
  func.func @transform_2(%arg0: i32) -> (i32, i32) {
    %c0_i32 = arith.constant 0 : i32
    %c0_i32_0 = arith.constant 0 : i32
    %c0_i32_1 = arith.constant 0 : i32
    return %c0_i32, %c0_i32_0 : i32, i32
  }
  func.func @transform_3(%arg0: i32) -> (i32, i32) {
    %c0_i32 = arith.constant 0 : i32
    %c0_i32_0 = arith.constant 0 : i32
    %c0_i32_1 = arith.constant 0 : i32
    return %c0_i32, %c0_i32_0 : i32, i32
  }
  func.func @transform_4(%arg0: i32) -> (i32, i32) {
    %c0_i32 = arith.constant 0 : i32
    %c0_i32_0 = arith.constant 0 : i32
    %c0_i32_1 = arith.constant 0 : i32
    return %c0_i32, %c0_i32_0 : i32, i32
  }
  func.func @transform_5(%arg0: i32) -> (i32, i32) {
    %c0_i32 = arith.constant 0 : i32
    %c0_i32_0 = arith.constant 0 : i32
    %c0_i32_1 = arith.constant 0 : i32
    return %c0_i32, %c0_i32_0 : i32, i32
  }
  func.func @transform_6(%arg0: i32) -> (i32, i32) {
    %c0_i32 = arith.constant 0 : i32
    %c0_i32_0 = arith.constant 0 : i32
    %c0_i32_1 = arith.constant 0 : i32
    return %c0_i32, %c0_i32_0 : i32, i32
  }
  func.func @transform_7(%arg0: i32) -> (i32, i32) {
    %c0_i32 = arith.constant 0 : i32
    %c0_i32_0 = arith.constant 0 : i32
    %c0_i32_1 = arith.constant 0 : i32
    return %c0_i32, %c0_i32_0 : i32, i32
  }
  func.func @transform_8(%arg0: i32) -> (i32, i32) {
    %c0_i32 = arith.constant 0 : i32
    %c0_i32_0 = arith.constant 0 : i32
    %c0_i32_1 = arith.constant 0 : i32
    return %c0_i32, %c0_i32_0 : i32, i32
  }
  func.func @transform_9(%arg0: i32) -> (i32, i32) {
    %c0_i32 = arith.constant 0 : i32
    %c0_i32_0 = arith.constant 0 : i32
    %c0_i32_1 = arith.constant 0 : i32
    return %c0_i32, %c0_i32_0 : i32, i32
  }
  func.func @transform_10(%arg0: i32) -> (i32, i32) {
    %c0_i32 = arith.constant 0 : i32
    %c0_i32_0 = arith.constant 0 : i32
    return %arg0, %c0_i32 : i32, i32
  }
}

</mosaic_0001>

<bundles_post_ra>
// kernel: tpu_custom_call.1
= control target key start
LH: loop header
LB: loop body
LE: loop exit
PB: predicated region body
PF: predicated region fallthrough
CT: control target
= control target key end

     0   :  { %s1469_s0 = inlined_call_operand.vmem [shape: f32[8,2,4], index: 0, kind: input, shape index: {}]   ;;  %s1470_s1 = inlined_call_operand.vmem [shape: f32[2,2], index: 1, kind: input, shape index: {}]   ;;  %s1471_s2 = inlined_call_operand.hbm [shape: f32[4,32], index: 2, kind: input, shape index: {}]   ;;  %s1472_s3 = inlined_call_operand.hbm [shape: f32[32,32], index: 3, kind: input, shape index: {}]   ;;  %s1473_s4 = inlined_call_operand.hbm [shape: f32[1,32], index: 4, kind: input, shape index: {}]   ;;  %s1474_s5 = inlined_call_operand.vmem [shape: f32[32,32], index: 5, kind: input, shape index: {}]   ;;  %s1475_s6 = inlined_call_operand.vmem [shape: f32[2,32], index: 6, kind: input, shape index: {}]   ;;  %s1476_s7 = inlined_call_operand.vmem [shape: f32[1,32], index: 7, kind: input, shape index: {}]   ;;  %s1477_s8 = inlined_call_operand.vmem [shape: f32[1,32], index: 8, kind: input, shape index: {}]   ;;  %s1478_s9 = inlined_call_operand.<no memory space> [shape: f32[1,1], index: 9, kind: input, shape index: {}]   ;;  %s1479_s10 = inlined_call_operand.vmem [shape: f32[2,1], index: 10, kind: output, shape index: {}]  }
   0x1   :  { %v15_v0 = vstv %s1478_s9 }
   0x2   :  { %16 = vst [vmem:[#allocation2] sm:$0x1] %v15_v0 }
   0x3   :  { %17 = vsyncpa [#allocation4], 0 }
   0x4   :  { %18 = vsyncpa [#allocation6], 0  ;;  %s1233_s15 = smov [#allocation5]  }
   0x5   :  { %s38_s16 = sshll.u32 %s1233_s15, 4  ;;  %s39_s16 = int_to_ptr.vmem [resolvable:$true] %s38_s16 }
   0x6   :  { %s1177_s17 = scalar_lea.vmem %s39_s16, 512  ;;  %p1182_p1 = scmp.lt.s32.totalorder %s39_s16, %s39_s16 }
   0x7   :  { %p1178_p0 = scmp.ne.s32.totalorder %s39_s16, %s1177_s17  ;;  %p1183_p2 = scmp.lt.s32.totalorder %s1177_s17, %s1177_s17 }
   0x9   :  { %p1184_p3 = por %p1183_p2, %p1182_p1 }
   0xb   :  { %p1185_p4 = pnand %p1184_p3, %p1178_p0 }
   0xd   :  { %1188 = shalt.err (!%p1185_p4)
}
   0xe   :  { %s1234_s18 = smov 128   ;;  %s1235_s19 = smov 8  }
   0xf   :  { %44 = dma.hbm_to_vmem [thread:$0]  %s1472_s3, 512, %s39_s16, [#allocation6], %s1234_s18, %s1234_s18, %s1235_s19  }
  0x10   :  { %s1236_s9 = smov [#allocation3]   ;;  %s1237_s23 = smov [#allocation7]  }
  0x11   :  { %s29_s22 = sshll.u32 %s1236_s9, 4  ;;  %s51_s24 = sshll.u32 %s1237_s23, 4  ;;  %s30_s22 = int_to_ptr.vmem [resolvable:$true] %s29_s22  ;;  %s52_s24 = int_to_ptr.vmem [resolvable:$true] %s51_s24 }
  0x12   :  { %s1197_s25 = scalar_lea.vmem %s30_s22, 64  ;;  %p1202_p6 = scmp.lt.s32.totalorder %s30_s22, %s30_s22 }
  0x13   :  { %p1198_p5 = scmp.ne.s32.totalorder %s30_s22, %s1197_s25  ;;  %p1203_p7 = scmp.lt.s32.totalorder %s1197_s25, %s1197_s25 }
  0x15   :  { %p1204_p8 = por %p1203_p7, %p1202_p6 }
  0x17   :  { %p1205_p9 = pnand %p1204_p8, %p1198_p5 }
  0x19   :  { %1208 = shalt.err (!%p1205_p9)
}
  0x1a   :  { %32 = dma.hbm_to_vmem [thread:$0]  %s1471_s2, 64, %s30_s22, [#allocation4]  }
  0x1b   :  { %s1217_s28 = scalar_lea.vmem %s52_s24, 16  ;;  %s1221_s3 = scalar_lea.vmem %s52_s24, 32 }
  0x1c   :  { %p1218_p10 = scmp.ne.s32.totalorder %s52_s24, %s1217_s28  ;;  %p1222_p11 = scmp.lt.s32.totalorder %s52_s24, %s52_s24 }
  0x1d   :  { %p1223_p12 = scmp.lt.s32.totalorder %s1221_s3, %s1217_s28 }
  0x1f   :  { %p1224_p13 = por %p1223_p12, %p1222_p11 }
  0x21   :  { %p1225_p0 = pnand %p1224_p13, %p1218_p10 }
  0x23   :  { %1228 = shalt.err (!%p1225_p0)
}
  0x24   :  { %54 = dma.hbm_to_vmem [thread:$0]  %s1473_s4, 16, %s52_s24, [#allocation6]  }
  0x25   :  { %1229 = dma.done.wait [#allocation4], 64  }
  0x26   :  { %1230 = vsyncadd [#allocation4], 4294967232 }
  0x27   :  { %1231 = dma.done.wait [#allocation6], 528  }
  0x28   :  { %1232 = vsyncadd [#allocation6], 4294966768  ;;  %v103_v1 = vlaneseq  ;;  %v1238_v2 = vmov 1983009808   ;;  %vm137_vm0 = vcmask 1043456   ;;  %vm132_vm1 = vcmask 31744  }
  0x29   :  { %v101_v3 = vunpack.c.l.s4 %v1238_v2  ;;  %v82_v7 = vld [vmem:[#allocation3] sm:$0xf]  ;;  %v77_v11 = vld [vmem:[%s1469_s0 + $0x6] sm:$0x3]  ;;  %v78_v13 = vld [vmem:[%s1469_s0 + $0x8] sm:$0x3] }
  0x2a   :  { %v104_v4 = vshrl.u32 %v103_v1, 7  ;;  %v74_v8 = vld [vmem:[%s1469_s0] sm:$0x3]  ;;  %v75_v9 = vld [vmem:[%s1469_s0 + $0x2] sm:$0x3]  ;;  %1047 = vmatprep.subr.msk.mxu1 %vm137_vm0, %v82_v7  ;;  %v1239_v27 = vmov 0.0  }
  0x2b   :  { %v102_v5 = vunpack.c.0.s8 %v101_v3  ;;  %v76_v10 = vld [vmem:[%s1469_s0 + $0x4] sm:$0x3]  ;;  %v98_v12 = vcombine.low %v74_v8, %v75_v9  ;;  %1048 = vmatpush3.msk.msra.mxu1 %vm137_vm0, %v82_v7  ;;  %v79_v15 = vld [vmem:[%s1469_s0 + $0xa] sm:$0x3]  ;;  %v80_v16 = vld [vmem:[%s1469_s0 + $0xc] sm:$0x3]  ;;  %1063 = vmatprep.subr.mxu0 %v1239_v27 }
  0x2c   :  { %v99_v14 = vcombine.low %v76_v10, %v77_v11  ;;  %v81_v17 = vld [vmem:[%s1469_s0 + $0xe] sm:$0x3]  ;;  %v115_v19 = vcombine.low %v78_v13, %v79_v15  ;;  %v1338_v26 = vld [vmem:[#allocation5 + $0x18] sm:$0xff]  ;;  %1052 = vmatprep.subr.mxu1 %v1239_v27  ;;  %v1341_v28 = vld [vmem:[#allocation5 + $0x10] sm:$0xff]  ;;  %vm1240_vm2 = vmmov 0   ;;  %vm265_vm3 = vcmask 261120  }
  0x2d   :  { %v1308_v6 = vsub.s32 %v102_v5, %v104_v4  ;;  %v116_v20 = vcombine.low %v80_v16, %v81_v17  ;;  %v1348_v29 = vld [vmem:[#allocation5 + $0x8] sm:$0xff]  ;;  %1064 = vmatpush3.msra.mxu0 %v1338_v26  ;;  %v1354_v30 = vld [vmem:[#allocation5] sm:$0xff]  ;;  %1071 = vmatprep.mubr.msk.f32.mxu0 %vm1240_vm2, %v1239_v27  ;;  %v796_v7 = vld [vmem:[%s1475_s6] sm:$0x3]  ;;  %vm801_vm4 = vcmask 1041408   ;;  %vm797_vm5 = vcmask 15360  }
  0x2e   :  { %1065 = vmatprep.subr.mxu0 %v1239_v27  ;;  %v985_v31 = vld [vmem:[#allocation7] ss:$0 sm:$0xff]  ;;  %v795_v8 = vld [vmem:[%s1470_s1] sm:$0x3]  ;;  %v793_v9 = vld [vmem:[%s1474_s5 + $0x10] sm:$0xff]  ;;  %vm965_vm6 = vcmask 254976  }
  0x2f   :  { %v106_v18 = vrot.slane %v98_v12, %v1308_v6  ;;  %v113_v21 = vrot.slane %v99_v14, %v1308_v6  ;;  %v123_v22 = vrot.slane %v115_v19, %v1308_v6  ;;  %v130_v23 = vrot.slane %v116_v20, %v1308_v6  ;;  %1066 = vmatpush3.msra.mxu0 %v1341_v28  ;;  %v792_v10 = vld [vmem:[%s1474_s5 + $0x8] sm:$0xff]  ;;  %v791_v11 = vld [vmem:[%s1474_s5] sm:$0xff] }
  0x30   :  { %1067 = vmatprep.subr.mxu0 %v1239_v27  ;;  %v999_v20 = vld [vmem:[%s1476_s7] ss:$0 sm:$0xff]  ;;  %vm977_vm7 = vcmask 1024  }
  0x31   :  { %v114_v24 = vcombine.low %v106_v18, %v113_v21  ;;  %v131_v25 = vcombine.low %v123_v22, %v130_v23  ;;  %1068 = vmatpush3.msra.mxu0 %v1348_v29 }
  0x32   :  { %1069 = vmatprep.subr.mxu0 %v1239_v27 }
  0x33   :  { %1049 = vmatprep.mubr.msk.f32.mxu1 %vm132_vm1, %v114_v24  ;;  %1070 = vmatpush3.msra.mxu0 %v1354_v30  ;;  %v1000_v24 = vld [vmem:[%s1477_s8] ss:$0 sm:$0xff] }
  0x34   :  { %1050 = vmatmul.mubr.msk.f32.vlgmr.msra.gmra.mxu1 %vm132_vm1, %v131_v25  ;;  %1085 = vmatprep.subr.mxu0 %v1239_v27 }
  0x35   :  { %1060 = vmatprep.mubr.msk.f32.mxu1 %vm1240_vm2, %v1239_v27  ;;  %1053 = vmatpush3.msra.mxu1 %v1338_v26 }
  0x36   :  { %1054 = vmatprep.subr.mxu1 %v1239_v27 }
  0x37   :  { %1055 = vmatpush3.msra.mxu1 %v1341_v28 }
  0x38   :  { %1056 = vmatprep.subr.mxu1 %v1239_v27 }
  0x39   :  { %1057 = vmatpush3.msra.mxu1 %v1348_v29 }
  0x3a   :  { %1058 = vmatprep.subr.mxu1 %v1239_v27 }
  0x3b   :  { %1059 = vmatpush3.msra.mxu1 %v1354_v30 }
  0x3c   :  { %1074 = vmatprep.subr.mxu1 %v1239_v27 }
  0xf4   :  { %v1051_v32 = vpop.f32.mrf.mxu1 }
  0xf5   :  { %v1368_v33 = vadd.f32 %v1051_v32, %v985_v31 }
  0xf6   :  { %v207_v34 = vpop.f32.mrf.mxu1 }
  0xf7   :  { %v208_v35 = vadd.f32 %v985_v31, %v207_v34  ;;  %v242_v54 = vrot.slane %v1368_v33, %v1308_v6  ;;  %v235_v0 = vcombine.high %v1368_v33, %v1368_v33 }
  0xf9   :  { %v225_v36 = vrot.slane %v208_v35, %v1308_v6  ;;  %v218_v43 = vcombine.high %v208_v35, %v208_v35  ;;  %v250_v59 = vcombine.high %v242_v54, %v242_v54  ;;  %v249_v1 = vrot.slane %v235_v0, %v1308_v6 }
  0xfb   :  { %1153 = vtanh.f32 %v225_v36  ;;  %v233_v38 = vcombine.high %v225_v36, %v225_v36  ;;  %v232_v44 = vrot.slane %v218_v43, %v1308_v6  ;;  %v794_v6 = vld [vmem:[%s1474_s5 + $0x18] sm:$0xff]  ;;  %v251_v12 = vcombine.high %v249_v1, %v249_v1 }
  0xfd   :  { %v234_v49 = vcombine.high %v232_v44, %v232_v44 }
 0x108   :  { %v1154_v37 = vpop.eup %1153 }
 0x109   :  { %1061 = vmatmul.mubr.msk.f32.vlgmr.msra.gmra.mxu1 %vm265_vm3, %v1154_v37 }
 0x10a   :  { %1075 = vmatpush3.msra.mxu1 %v1338_v26  ;;  %1082 = vmatprep.mubr.msk.f32.mxu1 %vm1240_vm2, %v1239_v27 }
 0x10b   :  { %1076 = vmatprep.subr.mxu1 %v1239_v27 }
 0x10c   :  { %1077 = vmatpush3.msra.mxu1 %v1341_v28 }
 0x10d   :  { %1078 = vmatprep.subr.mxu1 %v1239_v27 }
 0x10e   :  { %1079 = vmatpush3.msra.mxu1 %v1348_v29 }
 0x10f   :  { %1080 = vmatprep.subr.mxu1 %v1239_v27 }
 0x110   :  { %1081 = vmatpush3.msra.mxu1 %v1354_v30 }
 0x111   :  { %1096 = vmatprep.subr.mxu1 %v1239_v27 }
 0x1c9   :  { %v335_v39 = vpop.f32.mrf.mxu1 }
 0x1ca   :  { %v339_v40 = vadd.f32 %v335_v39, %v233_v38 }
 0x1cb   :  { %v1062_v41 = vpop.f32.mrf.mxu1 }
 0x1cc   :  { %1155 = vtanh.f32 %v339_v40 }
 0x1d9   :  { %v1156_v42 = vpop.eup %1155 }
 0x1da   :  { %1072 = vmatmul.mubr.msk.f32.vlgmr.msra.gmra.mxu0 %vm265_vm3, %v1156_v42 }
 0x1db   :  { %1086 = vmatpush3.msra.mxu0 %v1338_v26  ;;  %1093 = vmatprep.mubr.msk.f32.mxu0 %vm1240_vm2, %v1239_v27 }
 0x1dc   :  { %1087 = vmatprep.subr.mxu0 %v1239_v27 }
 0x1dd   :  { %1088 = vmatpush3.msra.mxu0 %v1341_v28 }
 0x1de   :  { %1089 = vmatprep.subr.mxu0 %v1239_v27 }
 0x1df   :  { %1090 = vmatpush3.msra.mxu0 %v1348_v29 }
 0x1e0   :  { %1091 = vmatprep.subr.mxu0 %v1239_v27 }
 0x1e1   :  { %1092 = vmatpush3.msra.mxu0 %v1354_v30 }
 0x1e2   :  { %1107 = vmatprep.subr.mxu0 %v1239_v27 }
 0x29a   :  { %v410_v45 = vpop.f32.mrf.mxu0 }
 0x29b   :  { %v414_v46 = vadd.f32 %v410_v45, %v232_v44 }
 0x29c   :  { %v1073_v47 = vpop.f32.mrf.mxu0 }
 0x29d   :  { %1157 = vtanh.f32 %v414_v46 }
 0x2aa   :  { %v1158_v48 = vpop.eup %1157 }
 0x2ab   :  { %1083 = vmatmul.mubr.msk.f32.vlgmr.msra.gmra.mxu1 %vm265_vm3, %v1158_v48 }
 0x2ac   :  { %1097 = vmatpush3.msra.mxu1 %v1338_v26  ;;  %1104 = vmatprep.mubr.msk.f32.mxu1 %vm1240_vm2, %v1239_v27 }
 0x2ad   :  { %1098 = vmatprep.subr.mxu1 %v1239_v27 }
 0x2ae   :  { %1099 = vmatpush3.msra.mxu1 %v1341_v28 }
 0x2af   :  { %1100 = vmatprep.subr.mxu1 %v1239_v27 }
 0x2b0   :  { %1101 = vmatpush3.msra.mxu1 %v1348_v29 }
 0x2b1   :  { %1102 = vmatprep.subr.mxu1 %v1239_v27 }
 0x2b2   :  { %1103 = vmatpush3.msra.mxu1 %v1354_v30 }
 0x2b3   :  { %1118 = vmatprep.subr.mxu1 %v1239_v27 }
 0x36b   :  { %v485_v50 = vpop.f32.mrf.mxu1 }
 0x36c   :  { %v489_v51 = vadd.f32 %v485_v50, %v234_v49 }
 0x36d   :  { %v1084_v52 = vpop.f32.mrf.mxu1 }
 0x36e   :  { %1159 = vtanh.f32 %v489_v51 }
 0x37b   :  { %v1160_v53 = vpop.eup %1159 }
 0x37c   :  { %1094 = vmatmul.mubr.msk.f32.vlgmr.msra.gmra.mxu0 %vm265_vm3, %v1160_v53 }
 0x37d   :  { %1108 = vmatpush3.msra.mxu0 %v1338_v26  ;;  %1115 = vmatprep.mubr.msk.f32.mxu0 %vm1240_vm2, %v1239_v27 }
 0x37e   :  { %1109 = vmatprep.subr.mxu0 %v1239_v27 }
 0x37f   :  { %1110 = vmatpush3.msra.mxu0 %v1341_v28 }
 0x380   :  { %1111 = vmatprep.subr.mxu0 %v1239_v27 }
 0x381   :  { %1112 = vmatpush3.msra.mxu0 %v1348_v29 }
 0x382   :  { %1113 = vmatprep.subr.mxu0 %v1239_v27 }
 0x383   :  { %1114 = vmatpush3.msra.mxu0 %v1354_v30 }
 0x384   :  { %1129 = vmatprep.subr.mxu0 %v1239_v27 }
 0x43c   :  { %v560_v55 = vpop.f32.mrf.mxu0 }
 0x43d   :  { %v564_v56 = vadd.f32 %v560_v55, %v242_v54 }
 0x43e   :  { %v1095_v57 = vpop.f32.mrf.mxu0 }
 0x43f   :  { %1161 = vtanh.f32 %v564_v56 }
 0x44c   :  { %v1162_v58 = vpop.eup %1161 }
 0x44d   :  { %1105 = vmatmul.mubr.msk.f32.vlgmr.msra.gmra.mxu1 %vm265_vm3, %v1162_v58 }
 0x44e   :  { %1119 = vmatpush3.msra.mxu1 %v1338_v26  ;;  %1126 = vmatprep.mubr.msk.f32.mxu1 %vm1240_vm2, %v1239_v27 }
 0x44f   :  { %1120 = vmatprep.subr.mxu1 %v1239_v27 }
 0x450   :  { %1121 = vmatpush3.msra.mxu1 %v1341_v28  ;;  %v1001_v28 = vld [vmem:[#allocation2] ss:$0 sm:$0xff] }
 0x451   :  { %1122 = vmatprep.subr.mxu1 %v1239_v27 }
 0x452   :  { %1123 = vmatpush3.msra.mxu1 %v1348_v29 }
 0x453   :  { %1124 = vmatprep.subr.mxu1 %v1239_v27 }
 0x454   :  { %1125 = vmatpush3.msra.mxu1 %v1354_v30 }
 0x50d   :  { %v635_v60 = vpop.f32.mrf.mxu1 }
 0x50e   :  { %v639_v61 = vadd.f32 %v635_v60, %v250_v59 }
 0x50f   :  { %v1106_v62 = vpop.f32.mrf.mxu1 }
 0x510   :  { %1163 = vtanh.f32 %v639_v61 }
 0x51d   :  { %v1164_v63 = vpop.eup %1163 }
 0x51e   :  { %1116 = vmatmul.mubr.msk.f32.vlgmr.msra.gmra.mxu0 %vm265_vm3, %v1164_v63 }
 0x51f   :  { %1131 = vmatprep.mubr.msk.f32.mxu0 %vm1240_vm2, %v1239_v27  ;;  %1130 = vmatpush3.msk.msra.mxu0 %vm801_vm4, %v796_v7 }
 0x520   :  { %1134 = vmatprep.subr.mxu0 %v1239_v27 }
 0x522   :  { %1132 = vmatmul.mubr.msk.f32.vlgmr.msra.gmra.mxu0 %vm797_vm5, %v795_v8 }
 0x523   :  { %1135 = vmatpush3.msra.mxu0 %v794_v6  ;;  %1142 = vmatprep.mubr.msk.f32.mxu0 %vm1240_vm2, %v1239_v27 }
 0x524   :  { %1136 = vmatprep.subr.mxu0 %v1239_v27 }
 0x525   :  { %1137 = vmatpush3.msra.mxu0 %v793_v9 }
 0x526   :  { %1138 = vmatprep.subr.mxu0 %v1239_v27 }
 0x527   :  { %1139 = vmatpush3.msra.mxu0 %v792_v10 }
 0x528   :  { %1140 = vmatprep.subr.mxu0 %v1239_v27 }
 0x529   :  { %1141 = vmatpush3.msra.mxu0 %v791_v11 }
 0x5de   :  { %v710_v2 = vpop.f32.mrf.mxu0 }
 0x5df   :  { %v714_v3 = vadd.f32 %v710_v2, %v249_v1 }
 0x5e0   :  { %v1117_v4 = vpop.f32.mrf.mxu0 }
 0x5e1   :  { %1165 = vtanh.f32 %v714_v3 }
 0x5e2   :  { %v871_v17 = vpop.f32.mrf.mxu0 }
 0x5e4   :  { %v1133_v18 = vpop.f32.mrf.mxu0 }
 0x5ee   :  { %v1166_v5 = vpop.eup %1165 }
 0x5ef   :  { %1127 = vmatmul.mubr.msk.f32.vlgmr.msra.gmra.mxu1 %vm265_vm3, %v1166_v5 }
 0x6af   :  { %v785_v13 = vpop.f32.mrf.mxu1 }
 0x6b0   :  { %v789_v14 = vadd.f32 %v785_v13, %v251_v12 }
 0x6b1   :  { %v1128_v15 = vpop.f32.mrf.mxu1 }
 0x6b2   :  { %1167 = vtanh.f32 %v789_v14 }
 0x6bf   :  { %v1168_v16 = vpop.eup %1167 }
 0x6c0   :  { %1143 = vmatmul.mubr.msk.f32.vlgmr.msra.gmra.mxu0 %vm265_vm3, %v1168_v16 }
 0x780   :  { %v944_v19 = vpop.f32.mrf.mxu0 }
 0x781   :  { %v945_v21 = vadd.f32 %v944_v19, %v871_v17 }
 0x782   :  { %v1144_v22 = vpop.f32.mrf.mxu0 }
 0x783   :  { %v955_v23 = vadd.f32 %v999_v20, %v945_v21 }
 0x785   :  { %v956_v25 = vmax.f32 %v955_v23, 0.0 }
 0x787   :  { %v964_v26 = vmul.f32 %v1000_v24, %v956_v25 }
 0x789   :  { %v966_v27 = vsel %vm965_vm6, %v964_v26, 0.0 }
 0x78a   :  { %967 = vadd.xlane.f32.xlu0 %v966_v27 }
 0x813   :  { %v968_v29 = vpop.xlane.xlu0 %967 }
 0x814   :  { %v976_v30 = vadd.f32 %v1001_v28, %v968_v29 }
 0x816   :  { %978 = vst.msk [vmem:[%s1479_s10] sm:$0x3] %vm977_vm7, %v976_v30 }
 0x817   :  { %983 = vsyncpa [#allocation4], 1 }
 0x818   :  { %984 = vsyncpa [#allocation6], 1 }

</bundles_post_ra>
